<compile_context>
chip_gen: v5e
topology: v5e:2x2
jax: 0.10.0
libtpu: 0.0.40
codegen_flags: <defaults>
</compile_context>

<pallas_src>
import functools

import jax
import jax.numpy as jnp
from jax.experimental import pallas as pl
from jax.experimental.pallas import tpu as pltpu

POOLFORMER_SETTINGS = {
    'S24': [[4, 4, 12, 4], [64, 128, 320, 512], 0.1],
    'S36': [[6, 6, 18, 6], [64, 128, 320, 512], 0.2],
    'M36': [[6, 6, 18, 6], [96, 192, 384, 768], 0.3],
}

EPS = 1e-5  # torch GroupNorm default eps


def _default_vmem_limit():
    cap = 64 * 1024 * 1024  # conservative fallback
    try:
        info = pltpu.get_tpu_info()
        cap = int(getattr(info, 'vmem_capacity_bytes', cap))
    except Exception:
        pass
    # Half of the reported capacity, never above 64 MiB: safe even if the query
    # reports per-chip capacity on a two-TensorCore part (v7x).
    return min(cap // 2, 64 * 1024 * 1024)


VMEM_LIMIT = _default_vmem_limit()


def _round_up(x, m):
    return (x + m - 1) // m * m


def _pick_row_tile(m, row_bytes, target_bytes=1 << 20, max_rows=4096):
    """Row tile (multiple of 8) sized by bytes (~1 MiB streamed per grid step)."""
    m8 = _round_up(max(m, 8), 8)
    tr = max(8, (target_bytes // max(row_bytes, 1)) // 8 * 8)
    tr = min(tr, max_rows, m8)
    mp = _round_up(m8, tr)
    return mp, tr


# --------------------------------------------------------------------------
# Pallas kernels
# --------------------------------------------------------------------------
def _matmul_bias_kernel(x_ref, w_ref, b_ref, o_ref):
    # o = x @ w + b   (bf16 operands, f32 accumulate) -- PatchEmbed convs.
    o_ref[...] = (jnp.dot(x_ref[...], w_ref[...],
                          preferred_element_type=jnp.float32)
                  + b_ref[...]).astype(o_ref.dtype)


def _block_kernel(H, W, x_ref, g1_ref, b1_ref, ls1_ref, g2_ref, b2_ref,
                  ls2_ref, w1_ref, fb1_ref, w2_ref, fb2_ref, o_ref):
    """Fused PoolFormerBlock for one sample, on the flat (H*W, C) token view.

    out1 = x + ls1 * (AvgPool3x3_count_include_pad_False(norm1(x)) - norm1(x))
    out  = out1 + ls2 * fc2(GELU(fc1(norm2(out1))))
    """
    HW = H * W
    x = x_ref[0].astype(jnp.float32)                       # (HW, C)
    C = x.shape[-1]
    cnt = float(HW * C)

    # ---- norm1 = GroupNorm(1, C): per-sample, two-pass (centered) variance ----
    mean1 = jnp.sum(x) / cnt
    xc = x - mean1
    var1 = jnp.sum(xc * xc) / cnt
    y = xc * jax.lax.rsqrt(var1 + EPS) * g1_ref[...] + b1_ref[...]

    # ---- 3x3 window sum (separable) on the flat row-major (H*W, C) view ----
    # +-1 image row == +-W flat rows; +-1 image col == +-1 flat row (masked at
    # image-row boundaries).  All shifts run along the leading (non-lane) dim.
    if H > 1:
        zr = jnp.zeros((W, C), jnp.float32)
        cs = (y
              + jnp.concatenate([zr, y[:-W]], axis=0)
              + jnp.concatenate([y[W:], zr], axis=0))
    else:
        cs = y

    pf = jax.lax.broadcasted_iota(jnp.int32, (HW, 1), 0).astype(jnp.float32)
    hf = jnp.floor((pf + 0.5) / float(W))                  # image row index
    wf = pf - hf * float(W)                                # image col index

    if W > 1:
        zc = jnp.zeros((1, C), jnp.float32)
        left = jnp.concatenate([zc, cs[:-1]], axis=0)      # (h, w-1)
        right = jnp.concatenate([cs[1:], zc], axis=0)      # (h, w+1)
        lmask = (wf > 0.5).astype(jnp.float32)
        rmask = (wf < float(W) - 1.5).astype(jnp.float32)
        ws = cs + left * lmask + right * rmask
    else:
        ws = cs

    # count_include_pad=False: divide by the number of valid taps.
    rcnt = jnp.minimum(hf + 1.0, float(H - 1)) - jnp.maximum(hf - 1.0, 0.0) + 1.0
    ccnt = jnp.minimum(wf + 1.0, float(W - 1)) - jnp.maximum(wf - 1.0, 0.0) + 1.0
    pooled = ws * (1.0 / (rcnt * ccnt))                    # (HW,1) bcast over C

    # Token mixer + layer scale + residual.
    out = x + ls1_ref[...] * (pooled - y)

    # ---- norm2 (f32, centered, on the VMEM-resident f32 output) + MLP ----
    mean2 = jnp.sum(out) / cnt
    oc = out - mean2
    var2 = jnp.sum(oc * oc) / cnt
    y2 = oc * jax.lax.rsqrt(var2 + EPS) * g2_ref[...] + b2_ref[...]

    h = jnp.dot(y2.astype(jnp.bfloat16), w1_ref[...],
                preferred_element_type=jnp.float32) + fb1_ref[...]
    h = jax.nn.gelu(h, approximate=False)   # exact GELU == torch nn.GELU()
    m = jnp.dot(h.astype(jnp.bfloat16), w2_ref[...],
                preferred_element_type=jnp.float32) + fb2_ref[...]

    o_ref[0] = (out + ls2_ref[...] * m).astype(o_ref.dtype)


def _out_norm_kernel(x_ref, g_ref, b_ref, o_ref):
    # Stage-output GroupNorm(1, C): per-sample stats over (H*W, C), bf16 out.
    x = x_ref[0].astype(jnp.float32)
    cnt = float(x.shape[0] * x.shape[1])
    mean = jnp.sum(x) / cnt
    xc = x - mean
    var = jnp.sum(xc * xc) / cnt
    o_ref[0] = (xc * jax.lax.rsqrt(var + EPS) * g_ref[...]
                + b_ref[...]).astype(o_ref.dtype)


# --------------------------------------------------------------------------
# pallas_call wrappers
# --------------------------------------------------------------------------
def matmul_bias(x2d, w, b):
    # Row-tiled (M-grid) matmul+bias; weight/bias blocks stay resident in VMEM
    # (constant index_map -> fetched once per pallas_call).
    M, K = x2d.shape
    Nout = w.shape[1]
    Mp, TR = _pick_row_tile(M, (K + Nout) * 2)
    if Mp != M:
        x2d = jnp.pad(x2d, ((0, Mp - M), (0, 0)))
    out = pl.pallas_call(
        _matmul_bias_kernel,
        out_shape=jax.ShapeDtypeStruct((Mp, Nout), jnp.bfloat16),
        grid=(Mp // TR,),
        in_specs=[
            pl.BlockSpec((TR, K), lambda i: (i, 0)),
            pl.BlockSpec((K, Nout), lambda i: (0, 0)),
            pl.BlockSpec((1, Nout), lambda i: (0, 0)),
        ],
        out_specs=pl.BlockSpec((TR, Nout), lambda i: (i, 0)),
        compiler_params=pltpu.CompilerParams(
            dimension_semantics=("parallel",), vmem_limit_bytes=VMEM_LIMIT),
    )(x2d, w, b)
    return out[:M]


@functools.partial(jax.jit, static_argnums=(3, 4, 5))
def patch_embed(x, w2d, b, k, s, p):
    """Strided conv as: space-to-depth (1x relayout) + ceil(k/s)^2 super-tap
    im2col (4x expansion instead of k*k) + row-tiled bf16 matmul."""
    N, H, W, Cin = x.shape
    kk = -(-k // s)
    Ho = (H + 2 * p - k) // s + 1
    Wo = (W + 2 * p - k) // s + 1
    Hq = max(-(-(H + 2 * p) // s), Ho + kk - 1)
    Wq = max(-(-(W + 2 * p) // s), Wo + kk - 1)
    xp = jnp.pad(x, ((0, 0), (p, Hq * s - H - p), (p, Wq * s - W - p), (0, 0)))
    xs = xp.reshape(N, Hq, s, Wq, s, Cin).transpose(0, 1, 3, 2, 4, 5)
    xs = xs.reshape(N, Hq, Wq, s * s * Cin)
    cols = [xs[:, a:a + Ho, c0:c0 + Wo, :]
            for a in range(kk) for c0 in range(kk)]
    patches = jnp.concatenate(cols, axis=-1).reshape(N * Ho * Wo,
                                                     kk * kk * s * s * Cin)
    out = matmul_bias(patches, w2d, b)
    return out.reshape(N, Ho, Wo, w2d.shape[1])


@functools.partial(jax.jit, static_argnums=(0, 1))
def poolformer_block(H, W, x, g1, bt1, ls1, g2, bt2, ls2, w1, b1, w2, b2):
    """Fused PoolFormerBlock over x of shape (N, H*W, C); bf16 in / bf16 out."""
    N, HW, C = x.shape
    hidden = w1.shape[1]
    kernel = functools.partial(_block_kernel, H, W)
    # TODO(synk): add an H-tile (halo) grid axis so small-batch runs expose
    # multiple 'parallel' steps for v7x's two TensorCores and bound per-step
    # VMEM at large input resolutions.
    return pl.pallas_call(
        kernel,
        out_shape=jax.ShapeDtypeStruct((N, HW, C), jnp.bfloat16),
        grid=(N,),
        in_specs=[
            pl.BlockSpec((1, HW, C), lambda n: (n, 0, 0)),
            pl.BlockSpec((1, C), lambda n: (0, 0)),        # norm1 gamma
            pl.BlockSpec((1, C), lambda n: (0, 0)),        # norm1 beta
            pl.BlockSpec((1, C), lambda n: (0, 0)),        # layer_scale_1
            pl.BlockSpec((1, C), lambda n: (0, 0)),        # norm2 gamma
            pl.BlockSpec((1, C), lambda n: (0, 0)),        # norm2 beta
            pl.BlockSpec((1, C), lambda n: (0, 0)),        # layer_scale_2
            pl.BlockSpec((C, hidden), lambda n: (0, 0)),   # fc1 weight
            pl.BlockSpec((1, hidden), lambda n: (0, 0)),   # fc1 bias
            pl.BlockSpec((hidden, C), lambda n: (0, 0)),   # fc2 weight
            pl.BlockSpec((1, C), lambda n: (0, 0)),        # fc2 bias
        ],
        out_specs=pl.BlockSpec((1, HW, C), lambda n: (n, 0, 0)),
        compiler_params=pltpu.CompilerParams(
            dimension_semantics=("parallel",), vmem_limit_bytes=VMEM_LIMIT),
    )(x, g1, bt1, ls1, g2, bt2, ls2, w1, b1, w2, b2)


@jax.jit
def out_groupnorm(x, g, b):
    """Stage-output GroupNorm(1, C) over (N, H*W, C); bf16 output."""
    N, HW, C = x.shape
    return pl.pallas_call(
        _out_norm_kernel,
        out_shape=jax.ShapeDtypeStruct((N, HW, C), jnp.bfloat16),
        grid=(N,),
        in_specs=[
            pl.BlockSpec((1, HW, C), lambda n: (n, 0, 0)),
            pl.BlockSpec((1, C), lambda n: (0, 0)),
            pl.BlockSpec((1, C), lambda n: (0, 0)),
        ],
        out_specs=pl.BlockSpec((1, HW, C), lambda n: (n, 0, 0)),
        compiler_params=pltpu.CompilerParams(
            dimension_semantics=("parallel",), vmem_limit_bytes=VMEM_LIMIT),
    )(x, g, b)


# --------------------------------------------------------------------------
# Parameter initialization (deterministic, synthetic)
# --------------------------------------------------------------------------
def pack_conv_weight(w, k, s):
    # (k, k, cin, cout) -> space-to-depth packed (kk*kk*s*s*cin, cout) bf16,
    # matching the super-tap im2col ordering used in patch_embed.
    kk = -(-k // s)
    cin, cout = w.shape[2], w.shape[3]
    wpad = jnp.zeros((kk * s, kk * s, cin, cout), w.dtype).at[:k, :k].set(w)
    wpk = wpad.reshape(kk, s, kk, s, cin, cout).transpose(0, 2, 1, 3, 4, 5)
    return wpk.reshape(kk * kk * s * s * cin, cout).astype(jnp.bfloat16)


def init_params(model_name='S24', in_ch=3):
    layers, dims, _ = POOLFORMER_SETTINGS[model_name]
    base_key = jax.random.PRNGKey(0)
    counter = [0]

    def nk():
        counter[0] += 1
        return jax.random.fold_in(base_key, counter[0])

    def conv_params(k, s, cin, cout):
        fan_in = k * k * cin
        w = jax.random.normal(nk(), (k, k, cin, cout), jnp.float32) / jnp.sqrt(float(fan_in))
        b = 0.02 * jax.random.normal(nk(), (1, cout), jnp.float32)
        return {'w': pack_conv_weight(w, k, s), 'b': b}

    def norm_params(dim):
        return {
            'g': 1.0 + 0.05 * jax.random.normal(nk(), (1, dim), jnp.float32),
            'b': 0.05 * jax.random.normal(nk(), (1, dim), jnp.float32),
        }

    params = {'stem': conv_params(7, 4, in_ch, dims[0]), 'stages': []}
    for i, (nblk, dim) in enumerate(zip(layers, dims)):
        hidden = dim * 4
        blocks = []
        for _ in range(nblk):
            n1 = norm_params(dim)
            n2 = norm_params(dim)
            blocks.append({
                'g1': n1['g'], 'bt1': n1['b'],
                'ls1': jnp.full((1, dim), 1e-5, jnp.float32),
                'g2': n2['g'], 'bt2': n2['b'],
                'ls2': jnp.full((1, dim), 1e-5, jnp.float32),
                'w1': (jax.random.normal(nk(), (dim, hidden), jnp.float32)
                       / jnp.sqrt(float(dim))).astype(jnp.bfloat16),
                'b1': 0.02 * jax.random.normal(nk(), (1, hidden), jnp.float32),
                'w2': (jax.random.normal(nk(), (hidden, dim), jnp.float32)
                       / jnp.sqrt(float(hidden))).astype(jnp.bfloat16),
                'b2': 0.02 * jax.random.normal(nk(), (1, dim), jnp.float32),
            })
        stage = {
            'blocks': blocks,
            'out_norm': norm_params(dim),
            'downsample': conv_params(3, 2, dim, dims[i + 1]) if i < len(dims) - 1 else None,
        }
        params['stages'].append(stage)
    return params


# --------------------------------------------------------------------------
# Forward pass (mirrors PoolFormer.forward)
# --------------------------------------------------------------------------
def poolformer_forward(x_nchw, params):
    x = jnp.transpose(x_nchw, (0, 2, 3, 1)).astype(jnp.bfloat16)   # NCHW -> NHWC
    x = patch_embed(x, params['stem']['w'], params['stem']['b'], 7, 4, 2)
    N, H, W, C = x.shape
    x = x.reshape(N, H * W, C)        # flat token view carried through a stage
    outs = []
    for stage in params['stages']:
        for blk in stage['blocks']:
            # DropPath == identity at inference time.
            x = poolformer_block(H, W, x,
                                 blk['g1'], blk['bt1'], blk['ls1'],
                                 blk['g2'], blk['bt2'], blk['ls2'],
                                 blk['w1'], blk['b1'], blk['w2'], blk['b2'])
        out = out_groupnorm(x, stage['out_norm']['g'], stage['out_norm']['b'])
        outs.append(jnp.transpose(out.reshape(N, H, W, C),
                                  (0, 3, 1, 2)).astype(jnp.float32))   # NCHW f32
        if stage['downsample'] is not None:
            x = patch_embed(x.reshape(N, H, W, C), stage['downsample']['w'],
                            stage['downsample']['b'], 3, 2, 1)
            N, H, W, C = x.shape
            x = x.reshape(N, H * W, C)
    return outs


# --------------------------------------------------------------------------
if __name__ == "__main__":
    params = init_params('S24')
    x = jax.random.normal(jax.random.PRNGKey(0), (2, 3, 32, 32), jnp.float32)

    outs = poolformer_forward(x, params)
    outs = jax.block_until_ready(outs)

    expected = [(2, 64, 8, 8), (2, 128, 4, 4), (2, 320, 2, 2), (2, 512, 1, 1)]
    assert [tuple(o.shape) for o in outs] == expected, \
        f"unexpected output shapes: {[o.shape for o in outs]}"
    assert all(bool(jnp.all(jnp.isfinite(o))) for o in outs), "non-finite values"

    print("KERNEL_OK")
</pallas_src>

<mosaic_0001>
module attributes {stable_mosaic.version = 11 : i64} {
  func.func @_matmul_bias_kernel(%arg0: i32, %arg1: memref<128x192xbf16, #tpu.memory_space<vmem>>, %arg2: memref<192x64xbf16, #tpu.memory_space<vmem>>, %arg3: memref<1x64xf32, #tpu.memory_space<vmem>>, %arg4: memref<128x64xbf16, #tpu.memory_space<vmem>>) attributes {dimension_semantics = [#tpu.dimension_semantics<parallel>], iteration_bounds = array<i64: 1>, scalar_prefetch = 0 : i64, scratch_operands = 0 : i64, tpu.core_type = #tpu.core_type<tc>, window_params = [{transform_indices = @transform_0, window_bounds = array<i64: 128, 192>}, {pipeline_mode = #tpu.pipeline_mode<synchronous>, transform_indices = @transform_1, window_bounds = array<i64: 192, 64>}, {pipeline_mode = #tpu.pipeline_mode<synchronous>, transform_indices = @transform_2, window_bounds = array<i64: 1, 64>}, {transform_indices = @transform_3, window_bounds = array<i64: 128, 64>}]} {
    %c0 = arith.constant 0 : index
    %c0_0 = arith.constant 0 : index
    %0 = vector.load %arg1[%c0, %c0_0] : memref<128x192xbf16, #tpu.memory_space<vmem>>, vector<128x192xbf16>
    %c0_1 = arith.constant 0 : index
    %c0_2 = arith.constant 0 : index
    %1 = vector.load %arg2[%c0_1, %c0_2] : memref<192x64xbf16, #tpu.memory_space<vmem>>, vector<192x64xbf16>
    %cst = arith.constant dense<0.000000e+00> : vector<128x64xf32>
    %2 = tpu.matmul %0, %1, %cst {dimension_numbers = #tpu.dot_dimension_numbers<[1], [0], [0], [1], [0, 0, 1, 1], [], []>} : vector<128x192xbf16>, vector<192x64xbf16>, vector<128x64xf32> -> vector<128x64xf32>
    %c0_3 = arith.constant 0 : index
    %c0_4 = arith.constant 0 : index
    %3 = vector.load %arg3[%c0_3, %c0_4] : memref<1x64xf32, #tpu.memory_space<vmem>>, vector<1x64xf32>
    %4 = vector.broadcast %3 : vector<1x64xf32> to vector<128x64xf32>
    %5 = arith.addf %2, %4 : vector<128x64xf32>
    %6 = arith.truncf %5 : vector<128x64xf32> to vector<128x64xbf16>
    %c0_5 = arith.constant 0 : index
    %c0_6 = arith.constant 0 : index
    %7 = vector.load %arg4[%c0_5, %c0_6] : memref<128x64xbf16, #tpu.memory_space<vmem>>, vector<128x64xbf16>
    tpu.vector_store %arg4[%c0_5, %c0_6], %6 {strides = array<i32>} : memref<128x64xbf16, #tpu.memory_space<vmem>>, vector<128x64xbf16>,
    return
  }
  func.func @transform_0(%arg0: i32) -> (i32, i32) {
    %c0_i32 = arith.constant 0 : i32
    %c0_i32_0 = arith.constant 0 : i32
    return %arg0, %c0_i32 : i32, i32
  }
  func.func @transform_1(%arg0: i32) -> (i32, i32) {
    %c0_i32 = arith.constant 0 : i32
    %c0_i32_0 = arith.constant 0 : i32
    %c0_i32_1 = arith.constant 0 : i32
    return %c0_i32, %c0_i32_0 : i32, i32
  }
  func.func @transform_2(%arg0: i32) -> (i32, i32) {
    %c0_i32 = arith.constant 0 : i32
    %c0_i32_0 = arith.constant 0 : i32
    %c0_i32_1 = arith.constant 0 : i32
    return %c0_i32, %c0_i32_0 : i32, i32
  }
  func.func @transform_3(%arg0: i32) -> (i32, i32) {
    %c0_i32 = arith.constant 0 : i32
    %c0_i32_0 = arith.constant 0 : i32
    return %arg0, %c0_i32 : i32, i32
  }
}

</mosaic_0001>

<bundles_post_ra>
// kernel: patch_embed.1
= control target key start
LH: loop header
LB: loop body
LE: loop exit
PB: predicated region body
PF: predicated region fallthrough
CT: control target
= control target key end

     0   :  { %s771_s0 = inlined_call_operand.vmem [shape: bf16[128,192], index: 0, kind: input, shape index: {}]   ;;  %s772_s1 = inlined_call_operand.vmem [shape: bf16[192,64], index: 1, kind: input, shape index: {}]   ;;  %s773_s2 = inlined_call_operand.vmem [shape: f32[1,64], index: 2, kind: input, shape index: {}]   ;;  %s774_s3 = inlined_call_operand.hbm [shape: bf16[128,64], index: 3, kind: output, shape index: {}]  }
   0x1   :  { %v521_v0 = vld [vmem:[%s772_s1 + $0x38] sm:$0xff]  ;;  %v520_v2 = vld [vmem:[%s772_s1 + $0x30] sm:$0xff]  ;;  %v519_v4 = vld [vmem:[%s772_s1 + $0x28] sm:$0xff] }
   0x2   :  { %v525_v1 = vld [vmem:[%s772_s1 + $0x58] sm:$0xff]  ;;  %229 = vmatpush.bf16.msra.mxu0 %v521_v0  ;;  %526 = vmatpush.bf16.msra.mxu2 %v521_v0  ;;  %v524_v3 = vld [vmem:[%s772_s1 + $0x50] sm:$0xff]  ;;  %v523_v5 = vld [vmem:[%s772_s1 + $0x48] sm:$0xff] }
   0x3   :  { %282 = vmatpush.bf16.msra.mxu1 %v525_v1  ;;  %534 = vmatpush.bf16.msra.mxu3 %v525_v1 }
   0x6   :  { %230 = vmatpush.bf16.msra.mxu0 %v520_v2  ;;  %527 = vmatpush.bf16.msra.mxu2 %v520_v2 }
   0x7   :  { %283 = vmatpush.bf16.msra.mxu1 %v524_v3  ;;  %535 = vmatpush.bf16.msra.mxu3 %v524_v3 }
   0x8   :  { %8 = vsyncpa [#allocation3], 0  ;;  %v518_v6 = vld [vmem:[%s772_s1 + $0x20] sm:$0xff]  ;;  %v382_v9 = vld [vmem:[%s771_s0 + $0x8] sm:$0xf0]  ;;  %vm204_vm0 = vcmask 523264  }
   0x9   :  { %v522_v7 = vld [vmem:[%s772_s1 + $0x40] sm:$0xff]  ;;  %v508_v10 = vld [vmem:[%s771_s0 + $0x54] sm:$0xf]  ;;  %v422_v11 = vld [vmem:[%s771_s0 + $0x58] sm:$0xf0]  ;;  %vm343_vm1 = vcmask 519168  }
   0xa   :  { %231 = vmatpush.bf16.msra.mxu0 %v519_v4  ;;  %528 = vmatpush.bf16.msra.mxu2 %v519_v4  ;;  %v498_v8 = vld [vmem:[%s771_s0 + $0x4] sm:$0xf]  ;;  %v517_v13 = vld [vmem:[%s772_s1 + $0x18] sm:$0xff]  ;;  %v425_v14 = vor.u32 %v508_v10, %v422_v11  ;;  %v516_v15 = vld [vmem:[%s772_s1 + $0x10] sm:$0xff]  ;;  %s366_s21 = sshll.u32 %s774_s3, 4  ;;  %s569_s22 = smov 64   ;;  %s367_s21 = int_to_ptr.hbm [resolvable:$true] %s366_s21 }
   0xb   :  { %284 = vmatpush.bf16.msra.mxu1 %v523_v5  ;;  %536 = vmatpush.bf16.msra.mxu3 %v523_v5  ;;  %v385_v12 = vor.u32 %v498_v8, %v382_v9  ;;  %v515_v16 = vld [vmem:[%s772_s1 + $0x8] sm:$0xff]  ;;  %v514_v17 = vld [vmem:[%s772_s1] sm:$0xff]  ;;  %v500_v22 = vld [vmem:[%s771_s0 + $0x14] sm:$0xf]  ;;  %s570_s23 = smov 4  }
   0xc   :  { %v380_v18 = vld [vmem:[%s771_s0] sm:$0xf]  ;;  %v499_v19 = vld [vmem:[%s771_s0 + $0x4] sm:$0xf0]  ;;  %v390_v23 = vld [vmem:[%s771_s0 + $0x18] sm:$0xf0] }
   0xd   :  { %v412_v20 = vld [vmem:[%s771_s0 + $0x40] sm:$0xf]  ;;  %v507_v21 = vld [vmem:[%s771_s0 + $0x44] sm:$0xf0]  ;;  %v510_v24 = vld [vmem:[%s771_s0 + $0x64] sm:$0xf]  ;;  %v381_v26 = vor.u32 %v499_v19, %v380_v18  ;;  %v393_v28 = vor.u32 %v500_v22, %v390_v23 }
   0xe   :  { %232 = vmatpush.bf16.msra.mxu0 %v518_v6  ;;  %529 = vmatpush.bf16.msra.mxu2 %v518_v6  ;;  %v430_v25 = vld [vmem:[%s771_s0 + $0x68] sm:$0xf0]  ;;  %v413_v27 = vor.u32 %v507_v21, %v412_v20  ;;  %v388_v30 = vld [vmem:[%s771_s0 + $0x10] sm:$0xf]  ;;  %v501_v31 = vld [vmem:[%s771_s0 + $0x14] sm:$0xf0] }
   0xf   :  { %285 = vmatpush.bf16.msra.mxu1 %v522_v7  ;;  %537 = vmatpush.bf16.msra.mxu3 %v522_v7  ;;  %v433_v29 = vor.u32 %v510_v24, %v430_v25  ;;  %v420_v32 = vld [vmem:[%s771_s0 + $0x50] sm:$0xf]  ;;  %v509_v33 = vld [vmem:[%s771_s0 + $0x54] sm:$0xf0]  ;;  %v502_v34 = vld [vmem:[%s771_s0 + $0x24] sm:$0xf]  ;;  %v389_v38 = vor.u32 %v501_v31, %v388_v30 }
  0x10   :  { %v398_v35 = vld [vmem:[%s771_s0 + $0x28] sm:$0xf0]  ;;  %v512_v36 = vld [vmem:[%s771_s0 + $0x74] sm:$0xf]  ;;  %v438_v37 = vld [vmem:[%s771_s0 + $0x78] sm:$0xf0]  ;;  %v421_v39 = vor.u32 %v509_v33, %v420_v32 }
  0x11   :  { %v401_v40 = vor.u32 %v502_v34, %v398_v35  ;;  %v441_v41 = vor.u32 %v512_v36, %v438_v37  ;;  %v396_v42 = vld [vmem:[%s771_s0 + $0x20] sm:$0xf]  ;;  %v503_v43 = vld [vmem:[%s771_s0 + $0x24] sm:$0xf0]  ;;  %v504_v46 = vld [vmem:[%s771_s0 + $0x34] sm:$0xf] }
  0x12   :  { %490 = vmatmul.msk.bf16.vlgmr.msra.gmra.mxu1 %vm204_vm0, %v385_v12  ;;  %233 = vmatpush.bf16.msra.mxu0 %v517_v13  ;;  %v428_v44 = vld [vmem:[%s771_s0 + $0x60] sm:$0xf]  ;;  %v511_v45 = vld [vmem:[%s771_s0 + $0x64] sm:$0xf0]  ;;  %v406_v47 = vld [vmem:[%s771_s0 + $0x38] sm:$0xf0]  ;;  %v397_v48 = vor.u32 %v503_v43, %v396_v42 }
  0x13   :  { %530 = vmatpush.bf16.msra.mxu2 %v517_v13  ;;  %495 = vmatmul.msk.bf16.vlgmr.msra.gmra.mxu3 %vm204_vm0, %v425_v14  ;;  %v429_v49 = vor.u32 %v511_v45, %v428_v44  ;;  %v409_v50 = vor.u32 %v504_v46, %v406_v47  ;;  %v404_v51 = vld [vmem:[%s771_s0 + $0x30] sm:$0xf]  ;;  %v505_v52 = vld [vmem:[%s771_s0 + $0x34] sm:$0xf0]  ;;  %v506_v55 = vld [vmem:[%s771_s0 + $0x44] sm:$0xf] }
  0x14   :  { %v436_v53 = vld [vmem:[%s771_s0 + $0x70] sm:$0xf]  ;;  %v513_v54 = vld [vmem:[%s771_s0 + $0x74] sm:$0xf0]  ;;  %v414_v56 = vld [vmem:[%s771_s0 + $0x48] sm:$0xf0]  ;;  %v405_v57 = vor.u32 %v505_v52, %v404_v51 }
  0x15   :  { %v437_v58 = vor.u32 %v513_v54, %v436_v53  ;;  %v417_v59 = vor.u32 %v506_v55, %v414_v56  ;;  %v734_v62 = vld [vmem:[%s773_s2] ss:$0 sm:$0xff]  ;;  %s568_s0 = smov [#allocation2]  }
  0x16   :  { %234 = vmatpush.bf16.msra.mxu0 %v516_v15  ;;  %s364_s2 = sshll.u32 %s568_s0, 4  ;;  %s365_s2 = int_to_ptr.vmem [resolvable:$true] %s364_s2 }
  0x17   :  { %531 = vmatpush.bf16.msra.mxu2 %v516_v15 }
  0x1a   :  { %235 = vmatpush.bf16.msra.mxu0 %v515_v16 }
  0x1b   :  { %532 = vmatpush.bf16.msra.mxu2 %v515_v16 }
  0x1e   :  { %236 = vmatpush.bf16.msra.mxu0 %v514_v17 }
  0x1f   :  { %533 = vmatpush.bf16.msra.mxu2 %v514_v17 }
  0x21   :  { %237 = vmatmul.bf16.vlgmr.msra.gmra.mxu0 %v381_v26 }
  0x22   :  { %257 = vmatmul.bf16.vlgmr.msra.gmra.mxu2 %v413_v27  ;;  %491 = vmatmul.msk.bf16.gmra.mxu1 %vm204_vm0, %v393_v28 }
  0x23   :  { %496 = vmatmul.msk.bf16.gmra.mxu3 %vm204_vm0, %v433_v29 }
  0x31   :  { %242 = vmatmul.bf16.gmra.mxu0 %v389_v38 }
  0x32   :  { %262 = vmatmul.bf16.gmra.mxu2 %v421_v39  ;;  %492 = vmatmul.msk.bf16.gmra.mxu1 %vm204_vm0, %v401_v40 }
  0x33   :  { %497 = vmatmul.msk.bf16.gmra.mxu3 %vm204_vm0, %v441_v41 }
  0x41   :  { %247 = vmatmul.bf16.gmra.mxu0 %v397_v48 }
  0x42   :  { %267 = vmatmul.bf16.gmra.mxu2 %v429_v49  ;;  %493 = vmatmul.msk.bf16.gmra.mxu1 %vm204_vm0, %v409_v50 }
  0x51   :  { %252 = vmatmul.bf16.gmra.mxu0 %v405_v57 }
  0x52   :  { %272 = vmatmul.bf16.gmra.mxu2 %v437_v58  ;;  %494 = vmatmul.msk.bf16.gmra.mxu1 %vm204_vm0, %v417_v59 }
  0x8f   :  { %v287_v60 = vpop.f32.mrf.mxu1 }
  0x96   :  { %v312_v11 = vpop.f32.mrf.mxu3 }
  0x97   :  { %v289_v61 = vpop.f32.mrf.mxu1 }
  0x9e   :  { %v238_v63 = vpop.f32.mrf.mxu0  ;;  %v314_v22 = vpop.f32.mrf.mxu3 }
  0x9f   :  { %v239_v0 = vadd.f32 %v734_v62, %v238_v63  ;;  %v292_v1 = vpop.f32.mrf.mxu1 }
  0xa1   :  { %v288_v2 = vadd.f32 %v287_v60, %v239_v0 }
  0xa3   :  { %v327_v3 = vpack.c.bf16 %v288_v2, %v288_v2 }
  0xa5   :  { %344 = vst.msk [vmem:[#allocation2] sm:$0xf] %vm343_vm1, %v327_v3  ;;  %v258_v4 = vpop.f32.mrf.mxu2 }
  0xa6   :  { %v240_v5 = vpop.f32.mrf.mxu0  ;;  %v317_v34 = vpop.f32.mrf.mxu3  ;;  %v259_v48 = vadd.f32 %v734_v62, %v258_v4 }
  0xa7   :  { %v241_v6 = vadd.f32 %v734_v62, %v240_v5  ;;  %v294_v7 = vpop.f32.mrf.mxu1 }
  0xa9   :  { %v290_v8 = vadd.f32 %v289_v61, %v241_v6 }
  0xab   :  { %v328_v9 = vpack.c.bf16 %v290_v8, %v290_v8 }
  0xad   :  { %345 = vst.msk [vmem:[#allocation2 + $0x4] sm:$0xf] %vm343_vm1, %v328_v9  ;;  %v260_v10 = vpop.f32.mrf.mxu2 }
  0xae   :  { %v243_v12 = vpop.f32.mrf.mxu0  ;;  %v319_v46 = vpop.f32.mrf.mxu3  ;;  %v261_v61 = vadd.f32 %v734_v62, %v260_v10 }
  0xaf   :  { %v244_v13 = vadd.f32 %v734_v62, %v243_v12  ;;  %v297_v14 = vpop.f32.mrf.mxu1 }
  0xb1   :  { %v293_v15 = vadd.f32 %v292_v1, %v244_v13 }
  0xb3   :  { %v329_v16 = vpack.c.bf16 %v293_v15, %v293_v15 }
  0xb5   :  { %346 = vst.msk [vmem:[#allocation2 + $0x8] sm:$0xf] %vm343_vm1, %v329_v16  ;;  %v263_v17 = vpop.f32.mrf.mxu2 }
  0xb6   :  { %v264_v18 = vadd.f32 %v734_v62, %v263_v17  ;;  %v245_v19 = vpop.f32.mrf.mxu0  ;;  %v322_v59 = vpop.f32.mrf.mxu3 }
  0xb7   :  { %v246_v20 = vadd.f32 %v734_v62, %v245_v19  ;;  %v299_v21 = vpop.f32.mrf.mxu1 }
  0xb8   :  { %v313_v23 = vadd.f32 %v312_v11, %v264_v18 }
  0xb9   :  { %v295_v24 = vadd.f32 %v294_v7, %v246_v20 }
  0xba   :  { %v337_v25 = vpack.c.bf16 %v313_v23, %v313_v23 }
  0xbb   :  { %v330_v26 = vpack.c.bf16 %v295_v24, %v295_v24 }
  0xbc   :  { %354 = vst.msk [vmem:[#allocation2 + $0x28] sm:$0xf] %vm343_vm1, %v337_v25 }
  0xbd   :  { %347 = vst.msk [vmem:[#allocation2 + $0xc] sm:$0xf] %vm343_vm1, %v330_v26  ;;  %v265_v27 = vpop.f32.mrf.mxu2 }
  0xbe   :  { %v266_v28 = vadd.f32 %v734_v62, %v265_v27  ;;  %v248_v29 = vpop.f32.mrf.mxu0  ;;  %v324_v11 = vpop.f32.mrf.mxu3 }
  0xbf   :  { %v249_v30 = vadd.f32 %v734_v62, %v248_v29  ;;  %v302_v31 = vpop.f32.mrf.mxu1 }
  0xc0   :  { %v315_v32 = vadd.f32 %v314_v22, %v266_v28 }
  0xc1   :  { %v298_v33 = vadd.f32 %v297_v14, %v249_v30 }
  0xc2   :  { %v338_v35 = vpack.c.bf16 %v315_v32, %v315_v32 }
  0xc3   :  { %v331_v36 = vpack.c.bf16 %v298_v33, %v298_v33 }
  0xc4   :  { %355 = vst.msk [vmem:[#allocation2 + $0x2c] sm:$0xf] %vm343_vm1, %v338_v35 }
  0xc5   :  { %348 = vst.msk [vmem:[#allocation2 + $0x10] sm:$0xf] %vm343_vm1, %v331_v36  ;;  %v268_v37 = vpop.f32.mrf.mxu2 }
  0xc6   :  { %v269_v38 = vadd.f32 %v734_v62, %v268_v37  ;;  %v250_v39 = vpop.f32.mrf.mxu0 }
  0xc7   :  { %v251_v40 = vadd.f32 %v734_v62, %v250_v39  ;;  %v304_v41 = vpop.f32.mrf.mxu1 }
  0xc8   :  { %v318_v42 = vadd.f32 %v317_v34, %v269_v38 }
  0xc9   :  { %v300_v43 = vadd.f32 %v299_v21, %v251_v40 }
  0xca   :  { %v339_v44 = vpack.c.bf16 %v318_v42, %v318_v42 }
  0xcb   :  { %v332_v45 = vpack.c.bf16 %v300_v43, %v300_v43 }
  0xcc   :  { %356 = vst.msk [vmem:[#allocation2 + $0x30] sm:$0xf] %vm343_vm1, %v339_v44 }
  0xcd   :  { %349 = vst.msk [vmem:[#allocation2 + $0x14] sm:$0xf] %vm343_vm1, %v332_v45  ;;  %v270_v47 = vpop.f32.mrf.mxu2 }
  0xce   :  { %v271_v49 = vadd.f32 %v734_v62, %v270_v47  ;;  %v253_v50 = vpop.f32.mrf.mxu0 }
  0xcf   :  { %v254_v51 = vadd.f32 %v734_v62, %v253_v50  ;;  %v307_v52 = vpop.f32.mrf.mxu1 }
  0xd0   :  { %v320_v53 = vadd.f32 %v319_v46, %v271_v49  ;;  %v308_v54 = vadd.f32 %v307_v52, %v259_v48 }
  0xd1   :  { %v303_v55 = vadd.f32 %v302_v31, %v254_v51 }
  0xd2   :  { %v340_v56 = vpack.c.bf16 %v320_v53, %v320_v53  ;;  %v335_v57 = vpack.c.bf16 %v308_v54, %v308_v54 }
  0xd3   :  { %v333_v58 = vpack.c.bf16 %v303_v55, %v303_v55 }
  0xd4   :  { %357 = vst.msk [vmem:[#allocation2 + $0x34] sm:$0xf] %vm343_vm1, %v340_v56 }
  0xd5   :  { %350 = vst.msk [vmem:[#allocation2 + $0x18] sm:$0xf] %vm343_vm1, %v333_v58  ;;  %v273_v60 = vpop.f32.mrf.mxu2 }
  0xd6   :  { %352 = vst.msk [vmem:[#allocation2 + $0x20] sm:$0xf] %vm343_vm1, %v335_v57  ;;  %v274_v63 = vadd.f32 %v734_v62, %v273_v60  ;;  %v255_v0 = vpop.f32.mrf.mxu0 }
  0xd7   :  { %v256_v1 = vadd.f32 %v734_v62, %v255_v0  ;;  %v309_v2 = vpop.f32.mrf.mxu1 }
  0xd8   :  { %v323_v3 = vadd.f32 %v322_v59, %v274_v63  ;;  %v310_v4 = vadd.f32 %v309_v2, %v261_v61 }
  0xd9   :  { %v305_v5 = vadd.f32 %v304_v41, %v256_v1 }
  0xda   :  { %v341_v6 = vpack.c.bf16 %v323_v3, %v323_v3  ;;  %v336_v7 = vpack.c.bf16 %v310_v4, %v310_v4 }
  0xdb   :  { %v334_v8 = vpack.c.bf16 %v305_v5, %v305_v5 }
  0xdc   :  { %358 = vst.msk [vmem:[#allocation2 + $0x38] sm:$0xf] %vm343_vm1, %v341_v6 }
  0xdd   :  { %351 = vst.msk [vmem:[#allocation2 + $0x1c] sm:$0xf] %vm343_vm1, %v334_v8  ;;  %v275_v9 = vpop.f32.mrf.mxu2 }
  0xde   :  { %353 = vst.msk [vmem:[#allocation2 + $0x24] sm:$0xf] %vm343_vm1, %v336_v7  ;;  %v276_v10 = vadd.f32 %v734_v62, %v275_v9 }
  0xe0   :  { %v325_v12 = vadd.f32 %v324_v11, %v276_v10 }
  0xe2   :  { %v342_v13 = vpack.c.bf16 %v325_v12, %v325_v12 }
  0xe4   :  { %359 = vst.msk [vmem:[#allocation2 + $0x3c] sm:$0xf] %vm343_vm1, %v342_v13 }
  0xe5   :  { %372 = dma.vmem_to_hbm [thread:$0]  %s365_s2, 1024, %s367_s21, [#allocation3], %s569_s22, %s569_s22, %s570_s23  }
  0xe6   :  { %566 = dma.done.wait [#allocation3], 1024  }
  0xe7   :  { %567 = vsyncadd [#allocation3], 4294966272 }
  0xe8   :  { %377 = vsyncpa [#allocation3], 1 }

</bundles_post_ra>
